<compile_context>
chip_gen: v7x
topology: tpu7x:2x2x1
jax: 0.10.0
libtpu: 0.0.40
codegen_flags: <defaults>
</compile_context>

<pallas_src>
import math
from typing import Any

import jax
import jax.numpy as jnp
from jax.experimental import pallas as pl
from jax.experimental.pallas import tpu as pltpu


def _choose_row_tile(B: int, F: int) -> int:
    """Batch tile: ~2 MiB f32 loss blocks, multiple of 8 rows (or the full B)."""
    target_rows = max(8, (2 * 1024 * 1024) // max(F * 4, 1))
    if B <= target_rows:
        return B                      # single block == full array (any B allowed)
    return max(8, (target_rows // 8) * 8)


def _make_reduce_kernel(B: int, TB: int):
    """Kernel for reduction='mean'/'sum': scalar sum + nonconvergence count only."""

    def kernel(loss_ref, status_ref, sum_ref, count_ref):
        i = pl.program_id(0)

        @pl.when(i == 0)
        def _init():
            sum_ref[0, 0] = jnp.float32(0.0)
            count_ref[0, 0] = jnp.int32(0)

        loss = loss_ref[...]                                   # (TB, F) f32
        status = status_ref[...]                               # (TB, 1) i32
        # Mask off padded rows of the (possibly ragged) last block.
        row = jax.lax.broadcasted_iota(jnp.int32, status.shape, 0) + i * TB
        valid = row < B
        err = jnp.logical_and(valid, status != 0)              # (TB, 1)
        keep = jnp.logical_and(valid, status == 0)              # (TB, 1)
        cleansed = jnp.where(keep, loss, jnp.float32(0.0))      # implicit broadcast
        sum_ref[0, 0] += jnp.sum(cleansed)
        count_ref[0, 0] += jnp.sum(err.astype(jnp.int32))

    return kernel


def _make_none_kernel(B: int, TB: int):
    """Kernel for reduction='none': cleansed (B,F) + nonconvergence count."""

    def kernel(loss_ref, status_ref, cleansed_ref, count_ref):
        i = pl.program_id(0)

        @pl.when(i == 0)
        def _init():
            count_ref[0, 0] = jnp.int32(0)

        loss = loss_ref[...]
        status = status_ref[...]
        row = jax.lax.broadcasted_iota(jnp.int32, status.shape, 0) + i * TB
        valid = row < B
        err = jnp.logical_and(valid, status != 0)
        # Writes to the out-of-bounds rows of a ragged last block are dropped
        # by Pallas, so no validity mask is needed on the store.
        cleansed_ref[...] = jnp.where(status == 0, loss, jnp.float32(0.0))
        count_ref[0, 0] += jnp.sum(err.astype(jnp.int32))

    return kernel


_COMPILER_PARAMS = pltpu.CompilerParams(
    dimension_semantics=("arbitrary",),      # grid axis carries the scalar accumulators
    vmem_limit_bytes=32 * 1024 * 1024,       # safe on v5e / v6e / v7x
)
# TODO(synk): on v7x the batch axis could be split "parallel" across the two
# TensorCores with per-core partial sums combined in the wrapper.


def _reduce_call(loss2d: jax.Array, status2d: jax.Array, tb: int | None = None):
    B, F = loss2d.shape
    TB = tb if tb is not None else _choose_row_tile(B, F)
    grid = (pl.cdiv(B, TB),)
    return pl.pallas_call(
        _make_reduce_kernel(B, TB),
        out_shape=(
            jax.ShapeDtypeStruct((1, 1), jnp.float32),
            jax.ShapeDtypeStruct((1, 1), jnp.int32),
        ),
        grid=grid,
        in_specs=[
            pl.BlockSpec((TB, F), lambda i: (i, 0)),
            pl.BlockSpec((TB, 1), lambda i: (i, 0)),
        ],
        out_specs=(
            pl.BlockSpec(memory_space=pltpu.MemorySpace.SMEM),
            pl.BlockSpec(memory_space=pltpu.MemorySpace.SMEM),
        ),
        compiler_params=_COMPILER_PARAMS,
    )(loss2d, status2d)


def _none_call(loss2d: jax.Array, status2d: jax.Array, tb: int | None = None):
    B, F = loss2d.shape
    TB = tb if tb is not None else _choose_row_tile(B, F)
    grid = (pl.cdiv(B, TB),)
    return pl.pallas_call(
        _make_none_kernel(B, TB),
        out_shape=(
            jax.ShapeDtypeStruct((B, F), jnp.float32),
            jax.ShapeDtypeStruct((1, 1), jnp.int32),
        ),
        grid=grid,
        in_specs=[
            pl.BlockSpec((TB, F), lambda i: (i, 0)),
            pl.BlockSpec((TB, 1), lambda i: (i, 0)),
        ],
        out_specs=(
            pl.BlockSpec((TB, F), lambda i: (i, 0)),
            pl.BlockSpec(memory_space=pltpu.MemorySpace.SMEM),
        ),
        compiler_params=_COMPILER_PARAMS,
    )(loss2d, status2d)


class CleanseAndReducePerSampleLoss:
    """JAX/Pallas port of leap_c.nn.modules.CleanseAndReducePerSampleLoss."""

    def __init__(self, reduction: str, num_batch_dimensions: int,
                 n_nonconvergences_allowed: int,
                 throw_exception_if_exceeded: bool = False):
        self.reduction = reduction
        self.num_batch_dimensions = num_batch_dimensions
        self.n_nonconvergences_allowed = n_nonconvergences_allowed
        self.throw_exception_if_exceeded = throw_exception_if_exceeded

    def __call__(self, per_sample_loss: jax.Array,
                 status: jax.Array) -> tuple[jax.Array, dict[str, Any]]:
        nbd = self.num_batch_dimensions
        if per_sample_loss.shape[:nbd] != status.shape[:nbd]:
            raise ValueError(
                "The per_sample_loss and status must have the same batch dimensions.")
        if len(status.shape) != nbd + 1:
            raise ValueError(
                "The status must have a shape corresponding to the number of batch "
                "dimensions, followed by one dimension containing the status.")
        if status.shape[-1] != 1:
            raise ValueError(
                "The last dimension of status must be of size 1, containing the "
                "status of each sample.")

        batch_shape = per_sample_loss.shape[:nbd]
        feat_shape = per_sample_loss.shape[nbd:]
        B = math.prod(batch_shape)
        F = math.prod(feat_shape) if feat_shape else 1

        loss2d = per_sample_loss.reshape(B, F).astype(jnp.float32)
        status2d = status.reshape(B, 1).astype(jnp.int32)

        if self.reduction == "none":
            cleansed2d, nonconv_count = _none_call(loss2d, status2d)
            loss_sum = None
        else:
            # mean/sum (and the "invalid reduction" path that may still early-return):
            # never materialize the cleansed array -> halves HBM traffic.
            loss_sum, nonconv_count = _reduce_call(loss2d, status2d)
            cleansed2d = None

        stats: dict[str, Any] = {}
        # Host sync is required for exact PyTorch `.item()` / Python-branch parity
        # (exception, early return of zeros(1), Python int in stats).
        nonconvergent_samples = int(nonconv_count[0, 0])
        stats["nonconvergent_samples"] = nonconvergent_samples

        if nonconvergent_samples > self.n_nonconvergences_allowed:
            if self.throw_exception_if_exceeded:
                raise ValueError(
                    "Number of nonconvergences exceeded the allowed number of "
                    f"{self.n_nonconvergences_allowed}.")
            stats["invalid_loss"] = False  # (matches original code verbatim)
            return jnp.zeros(1, dtype=jnp.float32), stats

        stats["invalid_loss"] = True
        if self.reduction == "mean":
            cleansed_mean = loss_sum[0, 0] / (B * F)
            batch_size = B
            result = cleansed_mean * batch_size / (batch_size - nonconvergent_samples)
        elif self.reduction == "sum":
            result = loss_sum[0, 0]
        elif self.reduction == "none":
            result = cleansed2d.reshape(per_sample_loss.shape).astype(per_sample_loss.dtype)
        else:
            raise ValueError("Reduction must be either 'mean', 'sum' or 'none'.")
        return result, stats


def _reference(per_sample_loss, status, reduction, nbd, n_allowed):
    # pure-JAX reference mirroring the PyTorch semantics
    mask = (status != 0)
    nonconv = int(jnp.sum(mask))
    if nonconv > n_allowed:
        return jnp.zeros(1), nonconv
    bshape = per_sample_loss.shape[:nbd]
    m = jnp.reshape(mask, bshape + (1,) * (per_sample_loss.ndim - nbd))
    cleansed = jnp.where(jnp.broadcast_to(m, per_sample_loss.shape),
                         0.0, per_sample_loss)
    if reduction == "mean":
        bs = math.prod(bshape)
        return jnp.mean(cleansed) * bs / (bs - nonconv), nonconv
    if reduction == "sum":
        return jnp.sum(cleansed), nonconv
    return cleansed, nonconv


if __name__ == "__main__":
    key = jax.random.PRNGKey(0)
    B, F = 8, 32  # batch=8 samples, 32 per-sample loss entries
    k1, k2, k3 = jax.random.split(key, 3)
    per_sample_loss = jax.random.normal(k1, (B, F), dtype=jnp.float32)
    # two nonconvergent samples (status != 0)
    status = jnp.array([0, 0, 1, 0, 0, 0, 2, 0], dtype=jnp.int32).reshape(B, 1)

    module = CleanseAndReducePerSampleLoss(
        reduction="mean",
        num_batch_dimensions=1,
        n_nonconvergences_allowed=3,
        throw_exception_if_exceeded=False,
    )

    result, stats = module(per_sample_loss, status)
    result = jax.block_until_ready(result)

    ref, ref_nonconv = _reference(per_sample_loss, status, "mean", 1, 3)
    assert stats["nonconvergent_samples"] == ref_nonconv
    assert jnp.allclose(result, ref, atol=1e-5, rtol=1e-5)

    # "none" and "sum" reductions + the exceeded branch
    mod_none = CleanseAndReducePerSampleLoss("none", 1, 3)
    r_none, _ = mod_none(per_sample_loss, status)
    ref_none, _ = _reference(per_sample_loss, status, "none", 1, 3)
    assert jnp.allclose(jax.block_until_ready(r_none), ref_none)

    mod_sum = CleanseAndReducePerSampleLoss("sum", 1, 3)
    r_sum, _ = mod_sum(per_sample_loss, status)
    ref_sum, _ = _reference(per_sample_loss, status, "sum", 1, 3)
    assert jnp.allclose(jax.block_until_ready(r_sum), ref_sum, atol=1e-5)

    mod_exceed = CleanseAndReducePerSampleLoss("mean", 1, 1)
    r_ex, st_ex = mod_exceed(per_sample_loss, status)
    assert r_ex.shape == (1,) and float(r_ex[0]) == 0.0 and st_ex["invalid_loss"] is False

    # multi-tile + ragged last block path (grid of 3 tiles of 8 rows over B=20)
    B2, F2 = 20, 32
    loss_b = jax.random.normal(k2, (B2, F2), dtype=jnp.float32)
    status_b = (jax.random.uniform(k3, (B2, 1)) < 0.25).astype(jnp.int32)
    mask_b = status_b != 0
    cleansed_ref_b = jnp.where(mask_b, 0.0, loss_b)

    s2, c2 = _reduce_call(loss_b, status_b, tb=8)
    s2 = jax.block_until_ready(s2)
    assert jnp.allclose(s2[0, 0], jnp.sum(cleansed_ref_b), atol=1e-4, rtol=1e-5)
    assert int(c2[0, 0]) == int(jnp.sum(mask_b))

    cl2, c3 = _none_call(loss_b, status_b, tb=8)
    cl2 = jax.block_until_ready(cl2)
    assert jnp.allclose(cl2, cleansed_ref_b)
    assert int(c3[0, 0]) == int(jnp.sum(mask_b))

    print("KERNEL_OK")
</pallas_src>

<mosaic_0001>
module attributes {stable_mosaic.version = 11 : i64} {
  func.func @kernel(%arg0: i32, %arg1: memref<8x32xf32, #tpu.memory_space<vmem>>, %arg2: memref<8x1xi32, #tpu.memory_space<vmem>>, %arg3: memref<1x1xf32, #tpu.memory_space<smem>>, %arg4: memref<1x1xi32, #tpu.memory_space<smem>>) attributes {dimension_semantics = [#tpu.dimension_semantics<arbitrary>], iteration_bounds = array<i64: 1>, scalar_prefetch = 0 : i64, scratch_operands = 0 : i64, tpu.core_type = #tpu.core_type<tc>, window_params = [{transform_indices = @transform_0, window_bounds = array<i64: 8, 32>}, {transform_indices = @transform_1, window_bounds = array<i64: 8, 1>}, {transform_indices = @transform_2, window_bounds = array<i64: 1, 1>}, {transform_indices = @transform_3, window_bounds = array<i64: 1, 1>}]} {
    %c0_i32 = arith.constant 0 : i32
    %0 = arith.cmpi eq, %arg0, %c0_i32 : i32
    %1 = arith.extui %0 : i1 to i32
    %c0_i32_0 = arith.constant 0 : i32
    %2 = arith.cmpi ne, %1, %c0_i32_0 : i32
    scf.if %2 {
      %cst_17 = arith.constant 0.000000e+00 : f32
      %c0_18 = arith.constant 0 : index
      %c0_19 = arith.constant 0 : index
      %36 = memref.load %arg3[%c0_18, %c0_19] : memref<1x1xf32, #tpu.memory_space<smem>>
      memref.store %cst_17, %arg3[%c0_18, %c0_19] : memref<1x1xf32, #tpu.memory_space<smem>>
      %c0_i32_20 = arith.constant 0 : i32
      %c0_21 = arith.constant 0 : index
      %c0_22 = arith.constant 0 : index
      %37 = memref.load %arg4[%c0_21, %c0_22] : memref<1x1xi32, #tpu.memory_space<smem>>
      memref.store %c0_i32_20, %arg4[%c0_21, %c0_22] : memref<1x1xi32, #tpu.memory_space<smem>>
    } else {
    }
    %c0 = arith.constant 0 : index
    %c0_1 = arith.constant 0 : index
    %3 = vector.load %arg1[%c0, %c0_1] : memref<8x32xf32, #tpu.memory_space<vmem>>, vector<8x32xf32>
    %c0_2 = arith.constant 0 : index
    %c0_3 = arith.constant 0 : index
    %4 = vector.load %arg2[%c0_2, %c0_3] : memref<8x1xi32, #tpu.memory_space<vmem>>, vector<8x1xi32>
    %5 = tpu.iota {dimensions = array<i32: 0>} : vector<8x1xi32>
    %c8_i32 = arith.constant 8 : i32
    %6 = arith.muli %arg0, %c8_i32 : i32
    %7 = vector.broadcast %6 : i32 to vector<8x1xi32>
    %8 = arith.addi %5, %7 : vector<8x1xi32>
    %c8_i32_4 = arith.constant 8 : i32
    %9 = vector.broadcast %c8_i32_4 : i32 to vector<8x1xi32>
    %10 = arith.cmpi slt, %8, %9 : vector<8x1xi32>
    %c0_i32_5 = arith.constant 0 : i32
    %11 = vector.broadcast %c0_i32_5 : i32 to vector<8x1xi32>
    %12 = arith.cmpi ne, %4, %11 : vector<8x1xi32>
    %13 = arith.andi %10, %12 : vector<8x1xi1>
    %c0_i32_6 = arith.constant 0 : i32
    %14 = vector.broadcast %c0_i32_6 : i32 to vector<8x1xi32>
    %15 = arith.cmpi eq, %4, %14 : vector<8x1xi32>
    %16 = arith.andi %10, %15 : vector<8x1xi1>
    %cst = arith.constant 0.000000e+00 : f32
    %17 = vector.shape_cast %16 : vector<8x1xi1> to vector<8x1xi1>
    %18 = vector.broadcast %17 : vector<8x1xi1> to vector<8x32xi1>
    %19 = vector.broadcast %cst : f32 to vector<8x32xf32>
    %20 = arith.select %18, %3, %19 : vector<8x32xi1>, vector<8x32xf32>
    %c0_7 = arith.constant 0 : index
    %c0_8 = arith.constant 0 : index
    %21 = memref.load %arg3[%c0_7, %c0_8] : memref<1x1xf32, #tpu.memory_space<smem>>
    %22 = vector.shape_cast %20 : vector<8x32xf32> to vector<1x8x32xf32>
    %cst_9 = arith.constant dense<0.000000e+00> : vector<1xf32>
    %23 = vector.multi_reduction <add>, %22, %cst_9 [1, 2] : vector<1x8x32xf32> to vector<1xf32>
    %24 = vector.shape_cast %23 : vector<1xf32> to vector<1x1x1xf32>
    %25 = vector.extract %24[0, 0, 0] : f32 from vector<1x1x1xf32>
    %26 = arith.addf %21, %25 : f32
    %c0_10 = arith.constant 0 : index
    %c0_11 = arith.constant 0 : index
    %27 = memref.load %arg3[%c0_10, %c0_11] : memref<1x1xf32, #tpu.memory_space<smem>>
    memref.store %26, %arg3[%c0_10, %c0_11] : memref<1x1xf32, #tpu.memory_space<smem>>
    %c0_12 = arith.constant 0 : index
    %c0_13 = arith.constant 0 : index
    %28 = memref.load %arg4[%c0_12, %c0_13] : memref<1x1xi32, #tpu.memory_space<smem>>
    %29 = arith.extui %13 : vector<8x1xi1> to vector<8x1xi32>
    %30 = vector.shape_cast %29 : vector<8x1xi32> to vector<1x8x1xi32>
    %cst_14 = arith.constant dense<0> : vector<1xi32>
    %31 = vector.multi_reduction <add>, %30, %cst_14 [1, 2] : vector<1x8x1xi32> to vector<1xi32>
    %32 = vector.shape_cast %31 : vector<1xi32> to vector<1x1x1xi32>
    %33 = vector.extract %32[0, 0, 0] : i32 from vector<1x1x1xi32>
    %34 = arith.addi %28, %33 : i32
    %c0_15 = arith.constant 0 : index
    %c0_16 = arith.constant 0 : index
    %35 = memref.load %arg4[%c0_15, %c0_16] : memref<1x1xi32, #tpu.memory_space<smem>>
    memref.store %34, %arg4[%c0_15, %c0_16] : memref<1x1xi32, #tpu.memory_space<smem>>
    return
  }
  func.func @transform_0(%arg0: i32) -> (i32, i32) {
    %c0_i32 = arith.constant 0 : i32
    %c0_i32_0 = arith.constant 0 : i32
    return %arg0, %c0_i32 : i32, i32
  }
  func.func @transform_1(%arg0: i32) -> (i32, i32) {
    %c0_i32 = arith.constant 0 : i32
    %c0_i32_0 = arith.constant 0 : i32
    return %arg0, %c0_i32 : i32, i32
  }
  func.func @transform_2(%arg0: i32) -> (i32, i32) {
    %c0_i32 = arith.constant 0 : i32
    %c0_i32_0 = arith.constant 0 : i32
    %c0_i32_1 = arith.constant 0 : i32
    return %c0_i32, %c0_i32_0 : i32, i32
  }
  func.func @transform_3(%arg0: i32) -> (i32, i32) {
    %c0_i32 = arith.constant 0 : i32
    %c0_i32_0 = arith.constant 0 : i32
    %c0_i32_1 = arith.constant 0 : i32
    return %c0_i32, %c0_i32_0 : i32, i32
  }
}

</mosaic_0001>

<bundles_post_ra>
// kernel: tpu_custom_call.1
= control target key start
LH: loop header
LB: loop body
LE: loop exit
PB: predicated region body
PF: predicated region fallthrough
CT: control target
= control target key end

     0   :  { %9 = vsyncpa [#allocation3], 0  ;;  %vm58_vm0 = vcmask 7168   ;;  %s194_s0 = inlined_call_operand.vmem [shape: f32[8,32], index: 0, kind: input, shape index: {}]   ;;  %s195_s1 = inlined_call_operand.vmem [shape: s32[8,1], index: 1, kind: input, shape index: {}]   ;;  %s196_s2 = inlined_call_operand.hbm [shape: f32[1,1], index: 2, kind: output, shape index: {0}]   ;;  %s197_s3 = inlined_call_operand.hbm [shape: s32[1,1], index: 3, kind: output, shape index: {1}]  }
   0x1   :  { %v24_v0 = vld [vmem:[%s195_s1] sm:$0xff] }
   0x2   :  { %10 = vsyncpa [#allocation5], 0  ;;  %v141_v1 = vmov 0   ;;  %vm33_vm1 = vcmp.eq.s32.totalorder %v24_v0, 0  ;;  %vm31_vm2 = vcmp.ne.s32.totalorder %v24_v0, 0  ;;  %v23_v9 = vld [vmem:[%s194_s0] sm:$0xff] }
   0x3   :  { %116 = vset.pattern.permute.xlu0 %v141_v1  ;;  %v35_v2 = vsel %vm33_vm1, 1, %v141_v1  ;;  %v57_v3 = vsel %vm31_vm2, 1, %v141_v1  ;;  %vm42_vm3 = vcmask 261120   ;;  %s117_s18 = scalar_lea.hbm %s196_s2, 16 }
   0x4   :  { %37 = vperm.xlu0 %116, %v35_v2   ;;  %v59_v4 = vsel %vm58_vm0, %v57_v3, 0  ;;  %p118_p0 = scmp.ne.s32.totalorder %s196_s2, %s117_s18  ;;  %p121_p1 = scmp.lt.u32.totalorder %s117_s18, %s196_s2 }
   0x5   :  { %v60_v5 = vand.u32 65535, %v59_v4  ;;  %v61_v7 = vshrl.u32 %v59_v4, 16 }
   0x6   :  { %p123_p2 = pnand %p121_p1, %p118_p0 }
   0x7   :  { %v62_v6 = vcvt.s32.f32 %v60_v5  ;;  %v63_v8 = vcvt.s32.f32 %v61_v7 }
   0x9   :  { %64 = vadd.xlane.f32.xlu1 %v62_v6 }
  0x23   :  { %66 = vadd.xlane.f32.xlu0 %v63_v8 }
  0x83   :  { %v38_v10 = vpop.permute.xlu0 %37 }
  0x84   :  { %vm39_vm4 = vcmp.eq.s32.totalorder %v38_v10, 1 }
  0x85   :  { %v40_v11 = vsel %vm39_vm4, %v23_v9, 0.0 }
  0x86   :  { %v43_v12 = vsel %vm42_vm3, %v40_v11, 0.0 }
  0x87   :  { %44 = vadd.xlane.f32.xlu1 %v43_v12 }
  0x96   :  { %v65_v15 = vpop.xlane.xlu1 %64 }
  0x97   :  { %v68_v17 = vcvt.f32.s32 %v65_v15 }
  0xb0   :  { %v67_v13 = vpop.xlane.xlu0 %66 }
  0xb1   :  { %v69_v14 = vcvt.f32.s32 %v67_v13 }
  0xb3   :  { %v70_v16 = vshll.u32 %v69_v14, 16 }
  0xb5   :  { %v71_v18 = vadd.s32 %v70_v16, %v68_v17 }
  0xb7   :  { %v72_v19 = vrot.slane %v71_v18, 4 }
  0xb9   :  { %v73_v20 = vadd.s32 %v72_v19, %v71_v18 }
  0xbb   :  { %v74_v22 = vrot.slane %v73_v20, 2 }
  0xbd   :  { %v75_v25 = vadd.s32 %v74_v22, %v73_v20 }
  0xbf   :  { %v76_v28 = vrot.slane %v75_v25, 1 }
  0xc1   :  { %v77_v31 = vadd.s32 %v76_v28, %v75_v25 }
 0x114   :  { %v45_v21 = vpop.xlane.xlu1 %44 }
 0x115   :  { %v46_v23 = vrot.slane %v45_v21, 4 }
 0x117   :  { %v47_v24 = vadd.f32 %v46_v23, %v45_v21 }
 0x119   :  { %v48_v26 = vrot.slane %v47_v24, 2 }
 0x11b   :  { %v49_v27 = vadd.f32 %v48_v26, %v47_v24 }
 0x11d   :  { %v50_v29 = vrot.slane %v49_v27, 1 }
 0x11f   :  { %v51_v30 = vadd.f32 %v50_v29, %v49_v27 }
 0x121   :  { %107 = vpush %v51_v30 }
 0x122   :  { %109 = vpush %v77_v31 }
 0x152   :  { %s108_s0 = spop %107 }
 0x153   :  { %s110_s1 = spop %109  ;;  %55 = sst [smem:[#allocation2]] %s108_s0 }
 0x154   :  { %126 = shalt.err (!%p123_p2)
}
 0x155   :  { %s142_s23 = smov [#allocation2]   ;;  %81 = sst [smem:[#allocation4]] %s110_s1 }
 0x156   :  { %89 = dma.smem_to_hbm %s142_s23, 16, %s196_s2, [#allocation3]  }
 0x157   :  { %s127_s28 = scalar_lea.hbm %s197_s3, 16 }
 0x158   :  { %p128_p3 = scmp.ne.s32.totalorder %s197_s3, %s127_s28  ;;  %p131_p4 = scmp.lt.u32.totalorder %s127_s28, %s197_s3 }
 0x15a   :  { %p133_p5 = pnand %p131_p4, %p128_p3 }
 0x15c   :  { %136 = shalt.err (!%p133_p5)
}
 0x15d   :  { %s143_s6 = smov [#allocation4]  }
 0x15e   :  { %97 = dma.smem_to_hbm %s143_s6, 16, %s197_s3, [#allocation5]  }
 0x15f   :  { %137 = dma.done.wait [#allocation3], 16  }
 0x160   :  { %138 = vsyncadd [#allocation3], 4294967280 }
 0x161   :  { %139 = dma.done.wait [#allocation5], 16  }
 0x162   :  { %140 = vsyncadd [#allocation5], 4294967280 }
 0x163   :  { %104 = sfence }
 0x164   :  { %105 = vsyncpa [#allocation3], 1 }
 0x165   :  { %106 = vsyncpa [#allocation5], 1 }

</bundles_post_ra>
